<compile_context>
chip_gen: v6e
topology: v6e:2x2x1
jax: 0.10.0
libtpu: 0.0.40
codegen_flags: <defaults>
</compile_context>

<pallas_src>
import functools

import jax
import jax.numpy as jnp
from jax import lax
from jax.experimental import pallas as pl
from jax.experimental.pallas import tpu as pltpu


def _round_up(x, m):
    return ((x + m - 1) // m) * m


# Smallest default scoped-VMEM limit across generations (v5e = 16 MiB).
_SCOPED_VMEM_FLOOR = 16 * 1024 * 1024


def _pick_block_b(b_rows, t_pad, itemsize):
    """Batch-block rows, sized from the scoped VMEM limit (not physical HBM/VMEM)."""
    # Keep total live VMEM under ~half of the v5e scoped default so the
    # double-buffered pipeline never spills on any generation.
    budget = _SCOPED_VMEM_FLOOR // 2
    per_row = (t_pad * 2 * itemsize      # double-buffered input block
               + t_pad * 3 * 4           # f32 tile + int32 bits + live mask
               + 2 * 128 * 4)            # lane-padded (rows, 1) output, 2 bufs
    sub = 8 * (4 // max(1, itemsize))    # 8 rows for f32, 16 for bf16
    cap_rows = max(sub, budget // per_row)
    max_rows = 4096 if t_pad <= 256 else 1024
    blk = min(_round_up(b_rows, sub), max_rows, cap_rows)
    return max(sub, (blk // sub) * sub)


def _num_tensorcores_per_chip():
    """2 on v7x-class chips (2 TCs/chip), else 1. Conservative on unknowns."""
    try:
        kind = jax.devices()[0].device_kind.lower()
    except Exception:
        return 1
    return 2 if "v7" in kind else 1


def _anomaly_kernel(att_ref, anom_ref, *, k, low_bit):
    """Exact top-k mean along lanes for one batch block.

    Radix-selects the exact k-th largest value per row by building its f32 bit
    pattern MSB->LSB (one cross-lane count reduction per bit).  For bf16
    inputs `low_bit=16` (upcast mantissa bits 15..0 are zero) -> 14 passes;
    for f32 `low_bit=0` -> 30 passes.
    """
    kf = jnp.float32(k)

    x = att_ref[...].astype(jnp.float32)            # reused as the value tile
    bits = pltpu.bitcast(x, jnp.int32)              # monotone for [0, 1] domain
    rows = bits.shape[0]

    prefix = jnp.zeros((rows, 1), jnp.int32)
    for b in range(29, low_bit - 1, -1):            # bits 31/30 clear for x < 2.0
        cand = prefix | jnp.int32(1 << b)
        cnt = jnp.sum(
            jnp.where(bits >= cand, jnp.float32(1.0), jnp.float32(0.0)),
            axis=-1, keepdims=True)                 # exact: counts << 2^24
        prefix = jnp.where(cnt >= kf, cand, prefix)
    kth = pltpu.bitcast(prefix, jnp.float32)        # (rows, 1) k-th largest

    # Fused, tie-invariant epilogue (single reduction):
    #   topk_sum = k * kth + sum(max(x - kth, 0))   => mean = kth + delta / k.
    # Zero-padded lanes never exceed kth >= 0, so they contribute nothing.
    delta = jnp.sum(jnp.where(x > kth, x - kth, jnp.float32(0.0)),
                    axis=-1, keepdims=True)
    anom_ref[...] = kth + delta / kf


def loss_forward(result, label, *, block_rows=None):
    """result: dict with 'frame' -> (B, T) probabilities; label: (B,) floats."""
    att = jnp.asarray(result["frame"])
    if att.dtype not in (jnp.float32, jnp.bfloat16):
        att = att.astype(jnp.float32)
    B, T = att.shape
    k = T // 16 + 1                                  # static Python int
    low_bit = 16 if att.dtype == jnp.bfloat16 else 0

    t_pad = _round_up(max(T, 128), 128)
    block_b = block_rows or _pick_block_b(B, t_pad, att.dtype.itemsize)
    b_pad = _round_up(max(B, block_b), block_b)
    grid_steps = b_pad // block_b

    # Zero padding is exact: padded lanes (0.0) never displace a real top-k
    # element (k <= T), and padded rows are sliced away below.
    att_p = jnp.pad(att, ((0, b_pad - B), (0, t_pad - T)))

    def _run(dim_sem):
        return pl.pallas_call(
            functools.partial(_anomaly_kernel, k=k, low_bit=low_bit),
            out_shape=jax.ShapeDtypeStruct((b_pad, 1), jnp.float32),
            grid_spec=pltpu.PrefetchScalarGridSpec(
                num_scalar_prefetch=0,
                grid=(grid_steps,),
                in_specs=[pl.BlockSpec((block_b, t_pad), lambda i: (i, 0))],
                out_specs=pl.BlockSpec((block_b, 1), lambda i: (i, 0)),
            ),
            compiler_params=pltpu.CompilerParams(dimension_semantics=dim_sem),
        )(att_p)

    # v7x: shard the batch grid across the 2 TensorCores.  Fall back to the
    # plain pipelined loop if CORE_PARALLEL is not available on this chip/build.
    attempts = [("parallel",)]
    if _num_tensorcores_per_chip() >= 2 and grid_steps >= 2:
        attempts.insert(0, (pltpu.CORE_PARALLEL,))
    per_row = None
    last_err = None
    for sem in attempts:
        try:
            per_row = _run(sem)
            break
        except Exception as e:                       # generation-specific fallback
            last_err = e
    if per_row is None:
        raise last_err

    # BCELoss (mean reduction, log clamped at -100) on the un-padded rows.
    anomaly = per_row[:B, 0]
    lab = jnp.asarray(label, jnp.float32).reshape(B)
    log_p = jnp.maximum(jnp.log(anomaly), jnp.float32(-100.0))
    log_1mp = jnp.maximum(jnp.log(jnp.float32(1.0) - anomaly),
                          jnp.float32(-100.0))
    cost = jnp.mean(-(lab * log_p + (jnp.float32(1.0) - lab) * log_1mp))
    return cost, {"total_loss": cost}


def _reference(att, label):
    """Pure-JAX reference for sanity checking."""
    att = jnp.asarray(att, jnp.float32)
    label = jnp.asarray(label, jnp.float32)
    T = att.shape[1]
    k = T // 16 + 1
    topk_vals = lax.top_k(att, k)[0]
    anomaly = topk_vals.mean(-1)
    log_p = jnp.maximum(jnp.log(anomaly), -100.0)
    log_1mp = jnp.maximum(jnp.log(1.0 - anomaly), -100.0)
    return jnp.mean(-(label * log_p + (1.0 - label) * log_1mp))


if __name__ == "__main__":
    # --- small f32 case (B=2, T=64 -> k=5) ---------------------------------
    key = jax.random.PRNGKey(0)
    B, T = 2, 64
    k_att, k_lab = jax.random.split(key)
    att = jax.nn.sigmoid(jax.random.normal(k_att, (B, T), dtype=jnp.float32))
    label = (jax.random.uniform(k_lab, (B,)) > 0.5).astype(jnp.float32)

    cost, loss_dict = loss_forward({"frame": att}, label)
    cost = jax.block_until_ready(cost)
    ref = jax.block_until_ready(_reference(att, label))
    assert jnp.allclose(cost, ref, atol=1e-4, rtol=1e-4), (cost, ref)
    assert jnp.allclose(loss_dict["total_loss"], ref, atol=1e-4, rtol=1e-4)

    # --- bf16 input, non-aligned shapes (14-iteration radix path) ----------
    B2, T2 = 5, 200                                  # k = 13, T padded to 256
    k2a, k2l = jax.random.split(jax.random.PRNGKey(1))
    att2 = jax.nn.sigmoid(
        jax.random.normal(k2a, (B2, T2), dtype=jnp.float32)).astype(jnp.bfloat16)
    label2 = (jax.random.uniform(k2l, (B2,)) > 0.5).astype(jnp.float32)

    cost2, _ = loss_forward({"frame": att2}, label2)
    cost2 = jax.block_until_ready(cost2)
    ref2 = jax.block_until_ready(_reference(att2.astype(jnp.float32), label2))
    assert jnp.allclose(cost2, ref2, atol=1e-4, rtol=1e-4), (cost2, ref2)

    # --- multi-step grid (forces several batch blocks through the pipeline) -
    B3, T3 = 40, 48                                  # k = 4
    k3a, k3l = jax.random.split(jax.random.PRNGKey(2))
    att3 = jax.nn.sigmoid(jax.random.normal(k3a, (B3, T3), dtype=jnp.float32))
    label3 = (jax.random.uniform(k3l, (B3,)) > 0.5).astype(jnp.float32)

    cost3, _ = loss_forward({"frame": att3}, label3, block_rows=16)  # grid = 3
    cost3 = jax.block_until_ready(cost3)
    ref3 = jax.block_until_ready(_reference(att3, label3))
    assert jnp.allclose(cost3, ref3, atol=1e-4, rtol=1e-4), (cost3, ref3)

    print("KERNEL_OK")
</pallas_src>

<mosaic_0001>
module attributes {stable_mosaic.version = 11 : i64} {
  func.func @_anomaly_kernel(%arg0: i32, %arg1: memref<8x128xf32, #tpu.memory_space<vmem>>, %arg2: memref<8x1xf32, #tpu.memory_space<vmem>>) attributes {dimension_semantics = [#tpu.dimension_semantics<parallel>], iteration_bounds = array<i64: 1>, scalar_prefetch = 0 : i64, scratch_operands = 0 : i64, tpu.core_type = #tpu.core_type<tc>, window_params = [{transform_indices = @transform_0, window_bounds = array<i64: 8, 128>}, {transform_indices = @transform_1, window_bounds = array<i64: 8, 1>}]} {
    %c0 = arith.constant 0 : index
    %c0_0 = arith.constant 0 : index
    %0 = vector.load %arg1[%c0, %c0_0] : memref<8x128xf32, #tpu.memory_space<vmem>>, vector<8x128xf32>
    %1 = tpu.bitcast %0 : vector<8x128xf32> -> vector<8x128xi32>
    %c0_i32 = arith.constant 0 : i32
    %2 = vector.broadcast %c0_i32 : i32 to vector<8x1xi32>
    %c536870912_i32 = arith.constant 536870912 : i32
    %3 = vector.broadcast %c536870912_i32 : i32 to vector<8x1xi32>
    %4 = arith.ori %2, %3 : vector<8x1xi32>
    %5 = vector.broadcast %4 : vector<8x1xi32> to vector<8x128xi32>
    %6 = arith.cmpi sge, %1, %5 : vector<8x128xi32>
    %cst = arith.constant 1.000000e+00 : f32
    %cst_1 = arith.constant 0.000000e+00 : f32
    %7 = vector.broadcast %cst : f32 to vector<8x128xf32>
    %8 = vector.broadcast %cst_1 : f32 to vector<8x128xf32>
    %9 = arith.select %6, %7, %8 : vector<8x128xi1>, vector<8x128xf32>
    %cst_2 = arith.constant dense<0.000000e+00> : vector<8xf32>
    %10 = vector.multi_reduction <add>, %9, %cst_2 [1] : vector<8x128xf32> to vector<8xf32>
    %11 = vector.shape_cast %10 : vector<8xf32> to vector<8x1xf32>
    %cst_3 = arith.constant 5.000000e+00 : f32
    %12 = vector.broadcast %cst_3 : f32 to vector<8x1xf32>
    %13 = arith.cmpf oge, %11, %12 : vector<8x1xf32>
    %14 = arith.select %13, %4, %2 : vector<8x1xi1>, vector<8x1xi32>
    %c268435456_i32 = arith.constant 268435456 : i32
    %15 = vector.broadcast %c268435456_i32 : i32 to vector<8x1xi32>
    %16 = arith.ori %14, %15 : vector<8x1xi32>
    %17 = vector.broadcast %16 : vector<8x1xi32> to vector<8x128xi32>
    %18 = arith.cmpi sge, %1, %17 : vector<8x128xi32>
    %cst_4 = arith.constant 1.000000e+00 : f32
    %cst_5 = arith.constant 0.000000e+00 : f32
    %19 = vector.broadcast %cst_4 : f32 to vector<8x128xf32>
    %20 = vector.broadcast %cst_5 : f32 to vector<8x128xf32>
    %21 = arith.select %18, %19, %20 : vector<8x128xi1>, vector<8x128xf32>
    %cst_6 = arith.constant dense<0.000000e+00> : vector<8xf32>
    %22 = vector.multi_reduction <add>, %21, %cst_6 [1] : vector<8x128xf32> to vector<8xf32>
    %23 = vector.shape_cast %22 : vector<8xf32> to vector<8x1xf32>
    %cst_7 = arith.constant 5.000000e+00 : f32
    %24 = vector.broadcast %cst_7 : f32 to vector<8x1xf32>
    %25 = arith.cmpf oge, %23, %24 : vector<8x1xf32>
    %26 = arith.select %25, %16, %14 : vector<8x1xi1>, vector<8x1xi32>
    %c134217728_i32 = arith.constant 134217728 : i32
    %27 = vector.broadcast %c134217728_i32 : i32 to vector<8x1xi32>
    %28 = arith.ori %26, %27 : vector<8x1xi32>
    %29 = vector.broadcast %28 : vector<8x1xi32> to vector<8x128xi32>
    %30 = arith.cmpi sge, %1, %29 : vector<8x128xi32>
    %cst_8 = arith.constant 1.000000e+00 : f32
    %cst_9 = arith.constant 0.000000e+00 : f32
    %31 = vector.broadcast %cst_8 : f32 to vector<8x128xf32>
    %32 = vector.broadcast %cst_9 : f32 to vector<8x128xf32>
    %33 = arith.select %30, %31, %32 : vector<8x128xi1>, vector<8x128xf32>
    %cst_10 = arith.constant dense<0.000000e+00> : vector<8xf32>
    %34 = vector.multi_reduction <add>, %33, %cst_10 [1] : vector<8x128xf32> to vector<8xf32>
    %35 = vector.shape_cast %34 : vector<8xf32> to vector<8x1xf32>
    %cst_11 = arith.constant 5.000000e+00 : f32
    %36 = vector.broadcast %cst_11 : f32 to vector<8x1xf32>
    %37 = arith.cmpf oge, %35, %36 : vector<8x1xf32>
    %38 = arith.select %37, %28, %26 : vector<8x1xi1>, vector<8x1xi32>
    %c67108864_i32 = arith.constant 67108864 : i32
    %39 = vector.broadcast %c67108864_i32 : i32 to vector<8x1xi32>
    %40 = arith.ori %38, %39 : vector<8x1xi32>
    %41 = vector.broadcast %40 : vector<8x1xi32> to vector<8x128xi32>
    %42 = arith.cmpi sge, %1, %41 : vector<8x128xi32>
    %cst_12 = arith.constant 1.000000e+00 : f32
    %cst_13 = arith.constant 0.000000e+00 : f32
    %43 = vector.broadcast %cst_12 : f32 to vector<8x128xf32>
    %44 = vector.broadcast %cst_13 : f32 to vector<8x128xf32>
    %45 = arith.select %42, %43, %44 : vector<8x128xi1>, vector<8x128xf32>
    %cst_14 = arith.constant dense<0.000000e+00> : vector<8xf32>
    %46 = vector.multi_reduction <add>, %45, %cst_14 [1] : vector<8x128xf32> to vector<8xf32>
    %47 = vector.shape_cast %46 : vector<8xf32> to vector<8x1xf32>
    %cst_15 = arith.constant 5.000000e+00 : f32
    %48 = vector.broadcast %cst_15 : f32 to vector<8x1xf32>
    %49 = arith.cmpf oge, %47, %48 : vector<8x1xf32>
    %50 = arith.select %49, %40, %38 : vector<8x1xi1>, vector<8x1xi32>
    %c33554432_i32 = arith.constant 33554432 : i32
    %51 = vector.broadcast %c33554432_i32 : i32 to vector<8x1xi32>
    %52 = arith.ori %50, %51 : vector<8x1xi32>
    %53 = vector.broadcast %52 : vector<8x1xi32> to vector<8x128xi32>
    %54 = arith.cmpi sge, %1, %53 : vector<8x128xi32>
    %cst_16 = arith.constant 1.000000e+00 : f32
    %cst_17 = arith.constant 0.000000e+00 : f32
    %55 = vector.broadcast %cst_16 : f32 to vector<8x128xf32>
    %56 = vector.broadcast %cst_17 : f32 to vector<8x128xf32>
    %57 = arith.select %54, %55, %56 : vector<8x128xi1>, vector<8x128xf32>
    %cst_18 = arith.constant dense<0.000000e+00> : vector<8xf32>
    %58 = vector.multi_reduction <add>, %57, %cst_18 [1] : vector<8x128xf32> to vector<8xf32>
    %59 = vector.shape_cast %58 : vector<8xf32> to vector<8x1xf32>
    %cst_19 = arith.constant 5.000000e+00 : f32
    %60 = vector.broadcast %cst_19 : f32 to vector<8x1xf32>
    %61 = arith.cmpf oge, %59, %60 : vector<8x1xf32>
    %62 = arith.select %61, %52, %50 : vector<8x1xi1>, vector<8x1xi32>
    %c16777216_i32 = arith.constant 16777216 : i32
    %63 = vector.broadcast %c16777216_i32 : i32 to vector<8x1xi32>
    %64 = arith.ori %62, %63 : vector<8x1xi32>
    %65 = vector.broadcast %64 : vector<8x1xi32> to vector<8x128xi32>
    %66 = arith.cmpi sge, %1, %65 : vector<8x128xi32>
    %cst_20 = arith.constant 1.000000e+00 : f32
    %cst_21 = arith.constant 0.000000e+00 : f32
    %67 = vector.broadcast %cst_20 : f32 to vector<8x128xf32>
    %68 = vector.broadcast %cst_21 : f32 to vector<8x128xf32>
    %69 = arith.select %66, %67, %68 : vector<8x128xi1>, vector<8x128xf32>
    %cst_22 = arith.constant dense<0.000000e+00> : vector<8xf32>
    %70 = vector.multi_reduction <add>, %69, %cst_22 [1] : vector<8x128xf32> to vector<8xf32>
    %71 = vector.shape_cast %70 : vector<8xf32> to vector<8x1xf32>
    %cst_23 = arith.constant 5.000000e+00 : f32
    %72 = vector.broadcast %cst_23 : f32 to vector<8x1xf32>
    %73 = arith.cmpf oge, %71, %72 : vector<8x1xf32>
    %74 = arith.select %73, %64, %62 : vector<8x1xi1>, vector<8x1xi32>
    %c8388608_i32 = arith.constant 8388608 : i32
    %75 = vector.broadcast %c8388608_i32 : i32 to vector<8x1xi32>
    %76 = arith.ori %74, %75 : vector<8x1xi32>
    %77 = vector.broadcast %76 : vector<8x1xi32> to vector<8x128xi32>
    %78 = arith.cmpi sge, %1, %77 : vector<8x128xi32>
    %cst_24 = arith.constant 1.000000e+00 : f32
    %cst_25 = arith.constant 0.000000e+00 : f32
    %79 = vector.broadcast %cst_24 : f32 to vector<8x128xf32>
    %80 = vector.broadcast %cst_25 : f32 to vector<8x128xf32>
    %81 = arith.select %78, %79, %80 : vector<8x128xi1>, vector<8x128xf32>
    %cst_26 = arith.constant dense<0.000000e+00> : vector<8xf32>
    %82 = vector.multi_reduction <add>, %81, %cst_26 [1] : vector<8x128xf32> to vector<8xf32>
    %83 = vector.shape_cast %82 : vector<8xf32> to vector<8x1xf32>
    %cst_27 = arith.constant 5.000000e+00 : f32
    %84 = vector.broadcast %cst_27 : f32 to vector<8x1xf32>
    %85 = arith.cmpf oge, %83, %84 : vector<8x1xf32>
    %86 = arith.select %85, %76, %74 : vector<8x1xi1>, vector<8x1xi32>
    %c4194304_i32 = arith.constant 4194304 : i32
    %87 = vector.broadcast %c4194304_i32 : i32 to vector<8x1xi32>
    %88 = arith.ori %86, %87 : vector<8x1xi32>
    %89 = vector.broadcast %88 : vector<8x1xi32> to vector<8x128xi32>
    %90 = arith.cmpi sge, %1, %89 : vector<8x128xi32>
    %cst_28 = arith.constant 1.000000e+00 : f32
    %cst_29 = arith.constant 0.000000e+00 : f32
    %91 = vector.broadcast %cst_28 : f32 to vector<8x128xf32>
    %92 = vector.broadcast %cst_29 : f32 to vector<8x128xf32>
    %93 = arith.select %90, %91, %92 : vector<8x128xi1>, vector<8x128xf32>
    %cst_30 = arith.constant dense<0.000000e+00> : vector<8xf32>
    %94 = vector.multi_reduction <add>, %93, %cst_30 [1] : vector<8x128xf32> to vector<8xf32>
    %95 = vector.shape_cast %94 : vector<8xf32> to vector<8x1xf32>
    %cst_31 = arith.constant 5.000000e+00 : f32
    %96 = vector.broadcast %cst_31 : f32 to vector<8x1xf32>
    %97 = arith.cmpf oge, %95, %96 : vector<8x1xf32>
    %98 = arith.select %97, %88, %86 : vector<8x1xi1>, vector<8x1xi32>
    %c2097152_i32 = arith.constant 2097152 : i32
    %99 = vector.broadcast %c2097152_i32 : i32 to vector<8x1xi32>
    %100 = arith.ori %98, %99 : vector<8x1xi32>
    %101 = vector.broadcast %100 : vector<8x1xi32> to vector<8x128xi32>
    %102 = arith.cmpi sge, %1, %101 : vector<8x128xi32>
    %cst_32 = arith.constant 1.000000e+00 : f32
    %cst_33 = arith.constant 0.000000e+00 : f32
    %103 = vector.broadcast %cst_32 : f32 to vector<8x128xf32>
    %104 = vector.broadcast %cst_33 : f32 to vector<8x128xf32>
    %105 = arith.select %102, %103, %104 : vector<8x128xi1>, vector<8x128xf32>
    %cst_34 = arith.constant dense<0.000000e+00> : vector<8xf32>
    %106 = vector.multi_reduction <add>, %105, %cst_34 [1] : vector<8x128xf32> to vector<8xf32>
    %107 = vector.shape_cast %106 : vector<8xf32> to vector<8x1xf32>
    %cst_35 = arith.constant 5.000000e+00 : f32
    %108 = vector.broadcast %cst_35 : f32 to vector<8x1xf32>
    %109 = arith.cmpf oge, %107, %108 : vector<8x1xf32>
    %110 = arith.select %109, %100, %98 : vector<8x1xi1>, vector<8x1xi32>
    %c1048576_i32 = arith.constant 1048576 : i32
    %111 = vector.broadcast %c1048576_i32 : i32 to vector<8x1xi32>
    %112 = arith.ori %110, %111 : vector<8x1xi32>
    %113 = vector.broadcast %112 : vector<8x1xi32> to vector<8x128xi32>
    %114 = arith.cmpi sge, %1, %113 : vector<8x128xi32>
    %cst_36 = arith.constant 1.000000e+00 : f32
    %cst_37 = arith.constant 0.000000e+00 : f32
    %115 = vector.broadcast %cst_36 : f32 to vector<8x128xf32>
    %116 = vector.broadcast %cst_37 : f32 to vector<8x128xf32>
    %117 = arith.select %114, %115, %116 : vector<8x128xi1>, vector<8x128xf32>
    %cst_38 = arith.constant dense<0.000000e+00> : vector<8xf32>
    %118 = vector.multi_reduction <add>, %117, %cst_38 [1] : vector<8x128xf32> to vector<8xf32>
    %119 = vector.shape_cast %118 : vector<8xf32> to vector<8x1xf32>
    %cst_39 = arith.constant 5.000000e+00 : f32
    %120 = vector.broadcast %cst_39 : f32 to vector<8x1xf32>
    %121 = arith.cmpf oge, %119, %120 : vector<8x1xf32>
    %122 = arith.select %121, %112, %110 : vector<8x1xi1>, vector<8x1xi32>
    %c524288_i32 = arith.constant 524288 : i32
    %123 = vector.broadcast %c524288_i32 : i32 to vector<8x1xi32>
    %124 = arith.ori %122, %123 : vector<8x1xi32>
    %125 = vector.broadcast %124 : vector<8x1xi32> to vector<8x128xi32>
    %126 = arith.cmpi sge, %1, %125 : vector<8x128xi32>
    %cst_40 = arith.constant 1.000000e+00 : f32
    %cst_41 = arith.constant 0.000000e+00 : f32
    %127 = vector.broadcast %cst_40 : f32 to vector<8x128xf32>
    %128 = vector.broadcast %cst_41 : f32 to vector<8x128xf32>
    %129 = arith.select %126, %127, %128 : vector<8x128xi1>, vector<8x128xf32>
    %cst_42 = arith.constant dense<0.000000e+00> : vector<8xf32>
    %130 = vector.multi_reduction <add>, %129, %cst_42 [1] : vector<8x128xf32> to vector<8xf32>
    %131 = vector.shape_cast %130 : vector<8xf32> to vector<8x1xf32>
    %cst_43 = arith.constant 5.000000e+00 : f32
    %132 = vector.broadcast %cst_43 : f32 to vector<8x1xf32>
    %133 = arith.cmpf oge, %131, %132 : vector<8x1xf32>
    %134 = arith.select %133, %124, %122 : vector<8x1xi1>, vector<8x1xi32>
    %c262144_i32 = arith.constant 262144 : i32
    %135 = vector.broadcast %c262144_i32 : i32 to vector<8x1xi32>
    %136 = arith.ori %134, %135 : vector<8x1xi32>
    %137 = vector.broadcast %136 : vector<8x1xi32> to vector<8x128xi32>
    %138 = arith.cmpi sge, %1, %137 : vector<8x128xi32>
    %cst_44 = arith.constant 1.000000e+00 : f32
    %cst_45 = arith.constant 0.000000e+00 : f32
    %139 = vector.broadcast %cst_44 : f32 to vector<8x128xf32>
    %140 = vector.broadcast %cst_45 : f32 to vector<8x128xf32>
    %141 = arith.select %138, %139, %140 : vector<8x128xi1>, vector<8x128xf32>
    %cst_46 = arith.constant dense<0.000000e+00> : vector<8xf32>
    %142 = vector.multi_reduction <add>, %141, %cst_46 [1] : vector<8x128xf32> to vector<8xf32>
    %143 = vector.shape_cast %142 : vector<8xf32> to vector<8x1xf32>
    %cst_47 = arith.constant 5.000000e+00 : f32
    %144 = vector.broadcast %cst_47 : f32 to vector<8x1xf32>
    %145 = arith.cmpf oge, %143, %144 : vector<8x1xf32>
    %146 = arith.select %145, %136, %134 : vector<8x1xi1>, vector<8x1xi32>
    %c131072_i32 = arith.constant 131072 : i32
    %147 = vector.broadcast %c131072_i32 : i32 to vector<8x1xi32>
    %148 = arith.ori %146, %147 : vector<8x1xi32>
    %149 = vector.broadcast %148 : vector<8x1xi32> to vector<8x128xi32>
    %150 = arith.cmpi sge, %1, %149 : vector<8x128xi32>
    %cst_48 = arith.constant 1.000000e+00 : f32
    %cst_49 = arith.constant 0.000000e+00 : f32
    %151 = vector.broadcast %cst_48 : f32 to vector<8x128xf32>
    %152 = vector.broadcast %cst_49 : f32 to vector<8x128xf32>
    %153 = arith.select %150, %151, %152 : vector<8x128xi1>, vector<8x128xf32>
    %cst_50 = arith.constant dense<0.000000e+00> : vector<8xf32>
    %154 = vector.multi_reduction <add>, %153, %cst_50 [1] : vector<8x128xf32> to vector<8xf32>
    %155 = vector.shape_cast %154 : vector<8xf32> to vector<8x1xf32>
    %cst_51 = arith.constant 5.000000e+00 : f32
    %156 = vector.broadcast %cst_51 : f32 to vector<8x1xf32>
    %157 = arith.cmpf oge, %155, %156 : vector<8x1xf32>
    %158 = arith.select %157, %148, %146 : vector<8x1xi1>, vector<8x1xi32>
    %c65536_i32 = arith.constant 65536 : i32
    %159 = vector.broadcast %c65536_i32 : i32 to vector<8x1xi32>
    %160 = arith.ori %158, %159 : vector<8x1xi32>
    %161 = vector.broadcast %160 : vector<8x1xi32> to vector<8x128xi32>
    %162 = arith.cmpi sge, %1, %161 : vector<8x128xi32>
    %cst_52 = arith.constant 1.000000e+00 : f32
    %cst_53 = arith.constant 0.000000e+00 : f32
    %163 = vector.broadcast %cst_52 : f32 to vector<8x128xf32>
    %164 = vector.broadcast %cst_53 : f32 to vector<8x128xf32>
    %165 = arith.select %162, %163, %164 : vector<8x128xi1>, vector<8x128xf32>
    %cst_54 = arith.constant dense<0.000000e+00> : vector<8xf32>
    %166 = vector.multi_reduction <add>, %165, %cst_54 [1] : vector<8x128xf32> to vector<8xf32>
    %167 = vector.shape_cast %166 : vector<8xf32> to vector<8x1xf32>
    %cst_55 = arith.constant 5.000000e+00 : f32
    %168 = vector.broadcast %cst_55 : f32 to vector<8x1xf32>
    %169 = arith.cmpf oge, %167, %168 : vector<8x1xf32>
    %170 = arith.select %169, %160, %158 : vector<8x1xi1>, vector<8x1xi32>
    %c32768_i32 = arith.constant 32768 : i32
    %171 = vector.broadcast %c32768_i32 : i32 to vector<8x1xi32>
    %172 = arith.ori %170, %171 : vector<8x1xi32>
    %173 = vector.broadcast %172 : vector<8x1xi32> to vector<8x128xi32>
    %174 = arith.cmpi sge, %1, %173 : vector<8x128xi32>
    %cst_56 = arith.constant 1.000000e+00 : f32
    %cst_57 = arith.constant 0.000000e+00 : f32
    %175 = vector.broadcast %cst_56 : f32 to vector<8x128xf32>
    %176 = vector.broadcast %cst_57 : f32 to vector<8x128xf32>
    %177 = arith.select %174, %175, %176 : vector<8x128xi1>, vector<8x128xf32>
    %cst_58 = arith.constant dense<0.000000e+00> : vector<8xf32>
    %178 = vector.multi_reduction <add>, %177, %cst_58 [1] : vector<8x128xf32> to vector<8xf32>
    %179 = vector.shape_cast %178 : vector<8xf32> to vector<8x1xf32>
    %cst_59 = arith.constant 5.000000e+00 : f32
    %180 = vector.broadcast %cst_59 : f32 to vector<8x1xf32>
    %181 = arith.cmpf oge, %179, %180 : vector<8x1xf32>
    %182 = arith.select %181, %172, %170 : vector<8x1xi1>, vector<8x1xi32>
    %c16384_i32 = arith.constant 16384 : i32
    %183 = vector.broadcast %c16384_i32 : i32 to vector<8x1xi32>
    %184 = arith.ori %182, %183 : vector<8x1xi32>
    %185 = vector.broadcast %184 : vector<8x1xi32> to vector<8x128xi32>
    %186 = arith.cmpi sge, %1, %185 : vector<8x128xi32>
    %cst_60 = arith.constant 1.000000e+00 : f32
    %cst_61 = arith.constant 0.000000e+00 : f32
    %187 = vector.broadcast %cst_60 : f32 to vector<8x128xf32>
    %188 = vector.broadcast %cst_61 : f32 to vector<8x128xf32>
    %189 = arith.select %186, %187, %188 : vector<8x128xi1>, vector<8x128xf32>
    %cst_62 = arith.constant dense<0.000000e+00> : vector<8xf32>
    %190 = vector.multi_reduction <add>, %189, %cst_62 [1] : vector<8x128xf32> to vector<8xf32>
    %191 = vector.shape_cast %190 : vector<8xf32> to vector<8x1xf32>
    %cst_63 = arith.constant 5.000000e+00 : f32
    %192 = vector.broadcast %cst_63 : f32 to vector<8x1xf32>
    %193 = arith.cmpf oge, %191, %192 : vector<8x1xf32>
    %194 = arith.select %193, %184, %182 : vector<8x1xi1>, vector<8x1xi32>
    %c8192_i32 = arith.constant 8192 : i32
    %195 = vector.broadcast %c8192_i32 : i32 to vector<8x1xi32>
    %196 = arith.ori %194, %195 : vector<8x1xi32>
    %197 = vector.broadcast %196 : vector<8x1xi32> to vector<8x128xi32>
    %198 = arith.cmpi sge, %1, %197 : vector<8x128xi32>
    %cst_64 = arith.constant 1.000000e+00 : f32
    %cst_65 = arith.constant 0.000000e+00 : f32
    %199 = vector.broadcast %cst_64 : f32 to vector<8x128xf32>
    %200 = vector.broadcast %cst_65 : f32 to vector<8x128xf32>
    %201 = arith.select %198, %199, %200 : vector<8x128xi1>, vector<8x128xf32>
    %cst_66 = arith.constant dense<0.000000e+00> : vector<8xf32>
    %202 = vector.multi_reduction <add>, %201, %cst_66 [1] : vector<8x128xf32> to vector<8xf32>
    %203 = vector.shape_cast %202 : vector<8xf32> to vector<8x1xf32>
    %cst_67 = arith.constant 5.000000e+00 : f32
    %204 = vector.broadcast %cst_67 : f32 to vector<8x1xf32>
    %205 = arith.cmpf oge, %203, %204 : vector<8x1xf32>
    %206 = arith.select %205, %196, %194 : vector<8x1xi1>, vector<8x1xi32>
    %c4096_i32 = arith.constant 4096 : i32
    %207 = vector.broadcast %c4096_i32 : i32 to vector<8x1xi32>
    %208 = arith.ori %206, %207 : vector<8x1xi32>
    %209 = vector.broadcast %208 : vector<8x1xi32> to vector<8x128xi32>
    %210 = arith.cmpi sge, %1, %209 : vector<8x128xi32>
    %cst_68 = arith.constant 1.000000e+00 : f32
    %cst_69 = arith.constant 0.000000e+00 : f32
    %211 = vector.broadcast %cst_68 : f32 to vector<8x128xf32>
    %212 = vector.broadcast %cst_69 : f32 to vector<8x128xf32>
    %213 = arith.select %210, %211, %212 : vector<8x128xi1>, vector<8x128xf32>
    %cst_70 = arith.constant dense<0.000000e+00> : vector<8xf32>
    %214 = vector.multi_reduction <add>, %213, %cst_70 [1] : vector<8x128xf32> to vector<8xf32>
    %215 = vector.shape_cast %214 : vector<8xf32> to vector<8x1xf32>
    %cst_71 = arith.constant 5.000000e+00 : f32
    %216 = vector.broadcast %cst_71 : f32 to vector<8x1xf32>
    %217 = arith.cmpf oge, %215, %216 : vector<8x1xf32>
    %218 = arith.select %217, %208, %206 : vector<8x1xi1>, vector<8x1xi32>
    %c2048_i32 = arith.constant 2048 : i32
    %219 = vector.broadcast %c2048_i32 : i32 to vector<8x1xi32>
    %220 = arith.ori %218, %219 : vector<8x1xi32>
    %221 = vector.broadcast %220 : vector<8x1xi32> to vector<8x128xi32>
    %222 = arith.cmpi sge, %1, %221 : vector<8x128xi32>
    %cst_72 = arith.constant 1.000000e+00 : f32
    %cst_73 = arith.constant 0.000000e+00 : f32
    %223 = vector.broadcast %cst_72 : f32 to vector<8x128xf32>
    %224 = vector.broadcast %cst_73 : f32 to vector<8x128xf32>
    %225 = arith.select %222, %223, %224 : vector<8x128xi1>, vector<8x128xf32>
    %cst_74 = arith.constant dense<0.000000e+00> : vector<8xf32>
    %226 = vector.multi_reduction <add>, %225, %cst_74 [1] : vector<8x128xf32> to vector<8xf32>
    %227 = vector.shape_cast %226 : vector<8xf32> to vector<8x1xf32>
    %cst_75 = arith.constant 5.000000e+00 : f32
    %228 = vector.broadcast %cst_75 : f32 to vector<8x1xf32>
    %229 = arith.cmpf oge, %227, %228 : vector<8x1xf32>
    %230 = arith.select %229, %220, %218 : vector<8x1xi1>, vector<8x1xi32>
    %c1024_i32 = arith.constant 1024 : i32
    %231 = vector.broadcast %c1024_i32 : i32 to vector<8x1xi32>
    %232 = arith.ori %230, %231 : vector<8x1xi32>
    %233 = vector.broadcast %232 : vector<8x1xi32> to vector<8x128xi32>
    %234 = arith.cmpi sge, %1, %233 : vector<8x128xi32>
    %cst_76 = arith.constant 1.000000e+00 : f32
    %cst_77 = arith.constant 0.000000e+00 : f32
    %235 = vector.broadcast %cst_76 : f32 to vector<8x128xf32>
    %236 = vector.broadcast %cst_77 : f32 to vector<8x128xf32>
    %237 = arith.select %234, %235, %236 : vector<8x128xi1>, vector<8x128xf32>
    %cst_78 = arith.constant dense<0.000000e+00> : vector<8xf32>
    %238 = vector.multi_reduction <add>, %237, %cst_78 [1] : vector<8x128xf32> to vector<8xf32>
    %239 = vector.shape_cast %238 : vector<8xf32> to vector<8x1xf32>
    %cst_79 = arith.constant 5.000000e+00 : f32
    %240 = vector.broadcast %cst_79 : f32 to vector<8x1xf32>
    %241 = arith.cmpf oge, %239, %240 : vector<8x1xf32>
    %242 = arith.select %241, %232, %230 : vector<8x1xi1>, vector<8x1xi32>
    %c512_i32 = arith.constant 512 : i32
    %243 = vector.broadcast %c512_i32 : i32 to vector<8x1xi32>
    %244 = arith.ori %242, %243 : vector<8x1xi32>
    %245 = vector.broadcast %244 : vector<8x1xi32> to vector<8x128xi32>
    %246 = arith.cmpi sge, %1, %245 : vector<8x128xi32>
    %cst_80 = arith.constant 1.000000e+00 : f32
    %cst_81 = arith.constant 0.000000e+00 : f32
    %247 = vector.broadcast %cst_80 : f32 to vector<8x128xf32>
    %248 = vector.broadcast %cst_81 : f32 to vector<8x128xf32>
    %249 = arith.select %246, %247, %248 : vector<8x128xi1>, vector<8x128xf32>
    %cst_82 = arith.constant dense<0.000000e+00> : vector<8xf32>
    %250 = vector.multi_reduction <add>, %249, %cst_82 [1] : vector<8x128xf32> to vector<8xf32>
    %251 = vector.shape_cast %250 : vector<8xf32> to vector<8x1xf32>
    %cst_83 = arith.constant 5.000000e+00 : f32
    %252 = vector.broadcast %cst_83 : f32 to vector<8x1xf32>
    %253 = arith.cmpf oge, %251, %252 : vector<8x1xf32>
    %254 = arith.select %253, %244, %242 : vector<8x1xi1>, vector<8x1xi32>
    %c256_i32 = arith.constant 256 : i32
    %255 = vector.broadcast %c256_i32 : i32 to vector<8x1xi32>
    %256 = arith.ori %254, %255 : vector<8x1xi32>
    %257 = vector.broadcast %256 : vector<8x1xi32> to vector<8x128xi32>
    %258 = arith.cmpi sge, %1, %257 : vector<8x128xi32>
    %cst_84 = arith.constant 1.000000e+00 : f32
    %cst_85 = arith.constant 0.000000e+00 : f32
    %259 = vector.broadcast %cst_84 : f32 to vector<8x128xf32>
    %260 = vector.broadcast %cst_85 : f32 to vector<8x128xf32>
    %261 = arith.select %258, %259, %260 : vector<8x128xi1>, vector<8x128xf32>
    %cst_86 = arith.constant dense<0.000000e+00> : vector<8xf32>
    %262 = vector.multi_reduction <add>, %261, %cst_86 [1] : vector<8x128xf32> to vector<8xf32>
    %263 = vector.shape_cast %262 : vector<8xf32> to vector<8x1xf32>
    %cst_87 = arith.constant 5.000000e+00 : f32
    %264 = vector.broadcast %cst_87 : f32 to vector<8x1xf32>
    %265 = arith.cmpf oge, %263, %264 : vector<8x1xf32>
    %266 = arith.select %265, %256, %254 : vector<8x1xi1>, vector<8x1xi32>
    %c128_i32 = arith.constant 128 : i32
    %267 = vector.broadcast %c128_i32 : i32 to vector<8x1xi32>
    %268 = arith.ori %266, %267 : vector<8x1xi32>
    %269 = vector.broadcast %268 : vector<8x1xi32> to vector<8x128xi32>
    %270 = arith.cmpi sge, %1, %269 : vector<8x128xi32>
    %cst_88 = arith.constant 1.000000e+00 : f32
    %cst_89 = arith.constant 0.000000e+00 : f32
    %271 = vector.broadcast %cst_88 : f32 to vector<8x128xf32>
    %272 = vector.broadcast %cst_89 : f32 to vector<8x128xf32>
    %273 = arith.select %270, %271, %272 : vector<8x128xi1>, vector<8x128xf32>
    %cst_90 = arith.constant dense<0.000000e+00> : vector<8xf32>
    %274 = vector.multi_reduction <add>, %273, %cst_90 [1] : vector<8x128xf32> to vector<8xf32>
    %275 = vector.shape_cast %274 : vector<8xf32> to vector<8x1xf32>
    %cst_91 = arith.constant 5.000000e+00 : f32
    %276 = vector.broadcast %cst_91 : f32 to vector<8x1xf32>
    %277 = arith.cmpf oge, %275, %276 : vector<8x1xf32>
    %278 = arith.select %277, %268, %266 : vector<8x1xi1>, vector<8x1xi32>
    %c64_i32 = arith.constant 64 : i32
    %279 = vector.broadcast %c64_i32 : i32 to vector<8x1xi32>
    %280 = arith.ori %278, %279 : vector<8x1xi32>
    %281 = vector.broadcast %280 : vector<8x1xi32> to vector<8x128xi32>
    %282 = arith.cmpi sge, %1, %281 : vector<8x128xi32>
    %cst_92 = arith.constant 1.000000e+00 : f32
    %cst_93 = arith.constant 0.000000e+00 : f32
    %283 = vector.broadcast %cst_92 : f32 to vector<8x128xf32>
    %284 = vector.broadcast %cst_93 : f32 to vector<8x128xf32>
    %285 = arith.select %282, %283, %284 : vector<8x128xi1>, vector<8x128xf32>
    %cst_94 = arith.constant dense<0.000000e+00> : vector<8xf32>
    %286 = vector.multi_reduction <add>, %285, %cst_94 [1] : vector<8x128xf32> to vector<8xf32>
    %287 = vector.shape_cast %286 : vector<8xf32> to vector<8x1xf32>
    %cst_95 = arith.constant 5.000000e+00 : f32
    %288 = vector.broadcast %cst_95 : f32 to vector<8x1xf32>
    %289 = arith.cmpf oge, %287, %288 : vector<8x1xf32>
    %290 = arith.select %289, %280, %278 : vector<8x1xi1>, vector<8x1xi32>
    %c32_i32 = arith.constant 32 : i32
    %291 = vector.broadcast %c32_i32 : i32 to vector<8x1xi32>
    %292 = arith.ori %290, %291 : vector<8x1xi32>
    %293 = vector.broadcast %292 : vector<8x1xi32> to vector<8x128xi32>
    %294 = arith.cmpi sge, %1, %293 : vector<8x128xi32>
    %cst_96 = arith.constant 1.000000e+00 : f32
    %cst_97 = arith.constant 0.000000e+00 : f32
    %295 = vector.broadcast %cst_96 : f32 to vector<8x128xf32>
    %296 = vector.broadcast %cst_97 : f32 to vector<8x128xf32>
    %297 = arith.select %294, %295, %296 : vector<8x128xi1>, vector<8x128xf32>
    %cst_98 = arith.constant dense<0.000000e+00> : vector<8xf32>
    %298 = vector.multi_reduction <add>, %297, %cst_98 [1] : vector<8x128xf32> to vector<8xf32>
    %299 = vector.shape_cast %298 : vector<8xf32> to vector<8x1xf32>
    %cst_99 = arith.constant 5.000000e+00 : f32
    %300 = vector.broadcast %cst_99 : f32 to vector<8x1xf32>
    %301 = arith.cmpf oge, %299, %300 : vector<8x1xf32>
    %302 = arith.select %301, %292, %290 : vector<8x1xi1>, vector<8x1xi32>
    %c16_i32 = arith.constant 16 : i32
    %303 = vector.broadcast %c16_i32 : i32 to vector<8x1xi32>
    %304 = arith.ori %302, %303 : vector<8x1xi32>
    %305 = vector.broadcast %304 : vector<8x1xi32> to vector<8x128xi32>
    %306 = arith.cmpi sge, %1, %305 : vector<8x128xi32>
    %cst_100 = arith.constant 1.000000e+00 : f32
    %cst_101 = arith.constant 0.000000e+00 : f32
    %307 = vector.broadcast %cst_100 : f32 to vector<8x128xf32>
    %308 = vector.broadcast %cst_101 : f32 to vector<8x128xf32>
    %309 = arith.select %306, %307, %308 : vector<8x128xi1>, vector<8x128xf32>
    %cst_102 = arith.constant dense<0.000000e+00> : vector<8xf32>
    %310 = vector.multi_reduction <add>, %309, %cst_102 [1] : vector<8x128xf32> to vector<8xf32>
    %311 = vector.shape_cast %310 : vector<8xf32> to vector<8x1xf32>
    %cst_103 = arith.constant 5.000000e+00 : f32
    %312 = vector.broadcast %cst_103 : f32 to vector<8x1xf32>
    %313 = arith.cmpf oge, %311, %312 : vector<8x1xf32>
    %314 = arith.select %313, %304, %302 : vector<8x1xi1>, vector<8x1xi32>
    %c8_i32 = arith.constant 8 : i32
    %315 = vector.broadcast %c8_i32 : i32 to vector<8x1xi32>
    %316 = arith.ori %314, %315 : vector<8x1xi32>
    %317 = vector.broadcast %316 : vector<8x1xi32> to vector<8x128xi32>
    %318 = arith.cmpi sge, %1, %317 : vector<8x128xi32>
    %cst_104 = arith.constant 1.000000e+00 : f32
    %cst_105 = arith.constant 0.000000e+00 : f32
    %319 = vector.broadcast %cst_104 : f32 to vector<8x128xf32>
    %320 = vector.broadcast %cst_105 : f32 to vector<8x128xf32>
    %321 = arith.select %318, %319, %320 : vector<8x128xi1>, vector<8x128xf32>
    %cst_106 = arith.constant dense<0.000000e+00> : vector<8xf32>
    %322 = vector.multi_reduction <add>, %321, %cst_106 [1] : vector<8x128xf32> to vector<8xf32>
    %323 = vector.shape_cast %322 : vector<8xf32> to vector<8x1xf32>
    %cst_107 = arith.constant 5.000000e+00 : f32
    %324 = vector.broadcast %cst_107 : f32 to vector<8x1xf32>
    %325 = arith.cmpf oge, %323, %324 : vector<8x1xf32>
    %326 = arith.select %325, %316, %314 : vector<8x1xi1>, vector<8x1xi32>
    %c4_i32 = arith.constant 4 : i32
    %327 = vector.broadcast %c4_i32 : i32 to vector<8x1xi32>
    %328 = arith.ori %326, %327 : vector<8x1xi32>
    %329 = vector.broadcast %328 : vector<8x1xi32> to vector<8x128xi32>
    %330 = arith.cmpi sge, %1, %329 : vector<8x128xi32>
    %cst_108 = arith.constant 1.000000e+00 : f32
    %cst_109 = arith.constant 0.000000e+00 : f32
    %331 = vector.broadcast %cst_108 : f32 to vector<8x128xf32>
    %332 = vector.broadcast %cst_109 : f32 to vector<8x128xf32>
    %333 = arith.select %330, %331, %332 : vector<8x128xi1>, vector<8x128xf32>
    %cst_110 = arith.constant dense<0.000000e+00> : vector<8xf32>
    %334 = vector.multi_reduction <add>, %333, %cst_110 [1] : vector<8x128xf32> to vector<8xf32>
    %335 = vector.shape_cast %334 : vector<8xf32> to vector<8x1xf32>
    %cst_111 = arith.constant 5.000000e+00 : f32
    %336 = vector.broadcast %cst_111 : f32 to vector<8x1xf32>
    %337 = arith.cmpf oge, %335, %336 : vector<8x1xf32>
    %338 = arith.select %337, %328, %326 : vector<8x1xi1>, vector<8x1xi32>
    %c2_i32 = arith.constant 2 : i32
    %339 = vector.broadcast %c2_i32 : i32 to vector<8x1xi32>
    %340 = arith.ori %338, %339 : vector<8x1xi32>
    %341 = vector.broadcast %340 : vector<8x1xi32> to vector<8x128xi32>
    %342 = arith.cmpi sge, %1, %341 : vector<8x128xi32>
    %cst_112 = arith.constant 1.000000e+00 : f32
    %cst_113 = arith.constant 0.000000e+00 : f32
    %343 = vector.broadcast %cst_112 : f32 to vector<8x128xf32>
    %344 = vector.broadcast %cst_113 : f32 to vector<8x128xf32>
    %345 = arith.select %342, %343, %344 : vector<8x128xi1>, vector<8x128xf32>
    %cst_114 = arith.constant dense<0.000000e+00> : vector<8xf32>
    %346 = vector.multi_reduction <add>, %345, %cst_114 [1] : vector<8x128xf32> to vector<8xf32>
    %347 = vector.shape_cast %346 : vector<8xf32> to vector<8x1xf32>
    %cst_115 = arith.constant 5.000000e+00 : f32
    %348 = vector.broadcast %cst_115 : f32 to vector<8x1xf32>
    %349 = arith.cmpf oge, %347, %348 : vector<8x1xf32>
    %350 = arith.select %349, %340, %338 : vector<8x1xi1>, vector<8x1xi32>
    %c1_i32 = arith.constant 1 : i32
    %351 = vector.broadcast %c1_i32 : i32 to vector<8x1xi32>
    %352 = arith.ori %350, %351 : vector<8x1xi32>
    %353 = vector.broadcast %352 : vector<8x1xi32> to vector<8x128xi32>
    %354 = arith.cmpi sge, %1, %353 : vector<8x128xi32>
    %cst_116 = arith.constant 1.000000e+00 : f32
    %cst_117 = arith.constant 0.000000e+00 : f32
    %355 = vector.broadcast %cst_116 : f32 to vector<8x128xf32>
    %356 = vector.broadcast %cst_117 : f32 to vector<8x128xf32>
    %357 = arith.select %354, %355, %356 : vector<8x128xi1>, vector<8x128xf32>
    %cst_118 = arith.constant dense<0.000000e+00> : vector<8xf32>
    %358 = vector.multi_reduction <add>, %357, %cst_118 [1] : vector<8x128xf32> to vector<8xf32>
    %359 = vector.shape_cast %358 : vector<8xf32> to vector<8x1xf32>
    %cst_119 = arith.constant 5.000000e+00 : f32
    %360 = vector.broadcast %cst_119 : f32 to vector<8x1xf32>
    %361 = arith.cmpf oge, %359, %360 : vector<8x1xf32>
    %362 = arith.select %361, %352, %350 : vector<8x1xi1>, vector<8x1xi32>
    %363 = tpu.bitcast %362 : vector<8x1xi32> -> vector<8x1xf32>
    %364 = vector.broadcast %363 : vector<8x1xf32> to vector<8x128xf32>
    %365 = arith.cmpf ogt, %0, %364 : vector<8x128xf32>
    %366 = vector.broadcast %363 : vector<8x1xf32> to vector<8x128xf32>
    %367 = arith.subf %0, %366 : vector<8x128xf32>
    %cst_120 = arith.constant 0.000000e+00 : f32
    %368 = vector.broadcast %cst_120 : f32 to vector<8x128xf32>
    %369 = arith.select %365, %367, %368 : vector<8x128xi1>, vector<8x128xf32>
    %cst_121 = arith.constant dense<0.000000e+00> : vector<8xf32>
    %370 = vector.multi_reduction <add>, %369, %cst_121 [1] : vector<8x128xf32> to vector<8xf32>
    %371 = vector.shape_cast %370 : vector<8xf32> to vector<8x1xf32>
    %cst_122 = arith.constant 5.000000e+00 : f32
    %372 = vector.broadcast %cst_122 : f32 to vector<8x1xf32>
    %373 = arith.divf %371, %372 : vector<8x1xf32>
    %374 = arith.addf %363, %373 : vector<8x1xf32>
    %c0_123 = arith.constant 0 : index
    %c0_124 = arith.constant 0 : index
    %375 = vector.load %arg2[%c0_123, %c0_124] : memref<8x1xf32, #tpu.memory_space<vmem>>, vector<8x1xf32>
    tpu.vector_store %arg2[%c0_123, %c0_124], %374 {strides = array<i32>} : memref<8x1xf32, #tpu.memory_space<vmem>>, vector<8x1xf32>,
    return
  }
  func.func @transform_0(%arg0: i32) -> (i32, i32) {
    %c0_i32 = arith.constant 0 : i32
    %c0_i32_0 = arith.constant 0 : i32
    return %arg0, %c0_i32 : i32, i32
  }
  func.func @transform_1(%arg0: i32) -> (i32, i32) {
    %c0_i32 = arith.constant 0 : i32
    %c0_i32_0 = arith.constant 0 : i32
    return %arg0, %c0_i32 : i32, i32
  }
}

</mosaic_0001>

<bundles_post_ra>
// kernel: tpu_custom_call.1
= control target key start
LH: loop header
LB: loop body
LE: loop exit
PB: predicated region body
PF: predicated region fallthrough
CT: control target
= control target key end

     0   :  { %6 = vsyncpa [#allocation3], 0  ;;  %s272_s6 = smov [#allocation2]   ;;  %s355_s0 = inlined_call_operand.hbm [shape: f32[8,128], index: 0, kind: input, shape index: {}]   ;;  %s356_s1 = inlined_call_operand.vmem [shape: f32[8,1], index: 1, kind: output, shape index: {}]  }
   0x1   :  { %s13_s7 = sshll.u32 %s272_s6, 4  ;;  %s14_s7 = int_to_ptr.vmem [resolvable:$true] %s13_s7 }
   0x2   :  { %s258_s8 = scalar_lea.vmem %s14_s7, 128  ;;  %p263_p1 = scmp.lt.s32.totalorder %s14_s7, %s14_s7 }
   0x3   :  { %p259_p0 = scmp.ne.s32.totalorder %s14_s7, %s258_s8  ;;  %p264_p2 = scmp.lt.s32.totalorder %s258_s8, %s258_s8 }
   0x5   :  { %p265_p3 = por %p264_p2, %p263_p1 }
   0x7   :  { %p266_p4 = pnand %p265_p3, %p259_p0 }
   0x9   :  { %269 = shalt.err (!%p266_p4)
}
   0xa   :  { %16 = dma.hbm_to_vmem [thread:$0]  %s355_s0, 128, %s14_s7, [#allocation3]  }
   0xb   :  { %270 = dma.done.wait [#allocation3], 128  }
   0xc   :  { %271 = vsyncadd [#allocation3], 4294967168  ;;  %v288_v0 = vld [vmem:[#allocation2] sm:$0xff]  ;;  %v273_v1 = vmov 0.0   ;;  %v274_v4 = vmov 0  }
   0xd   :  { %vm22_vm0 = vcmp.ge.s32.totalorder %v288_v0, 536870912 }
   0xe   :  { %v23_v2 = vsel %vm22_vm0, 1.0, %v273_v1 }
   0xf   :  { %24 = vadd.xlane.f32.xlu0 %v23_v2 }
  0x98   :  { %v25_v3 = vpop.xlane.xlu0 %24 }
  0x99   :  { %vm26_vm1 = vcmp.ge.f32.partialorder %v25_v3, 5.0 }
  0x9a   :  { %v27_v5 = vsel %vm26_vm1, 536870912, %v274_v4 }
  0x9b   :  { %v28_v6 = vor.u32 268435456, %v27_v5 }
  0x9d   :  { %vm29_vm2 = vcmp.ge.s32.totalorder %v288_v0, %v28_v6 }
  0x9e   :  { %v30_v7 = vsel %vm29_vm2, 1.0, %v273_v1 }
  0x9f   :  { %31 = vadd.xlane.f32.xlu0 %v30_v7 }
 0x128   :  { %v32_v8 = vpop.xlane.xlu0 %31 }
 0x129   :  { %vm33_vm3 = vcmp.ge.f32.partialorder %v32_v8, 5.0 }
 0x12a   :  { %v34_v9 = vsel %vm33_vm3, %v28_v6, %v27_v5 }
 0x12b   :  { %v35_v10 = vor.u32 134217728, %v34_v9 }
 0x12d   :  { %vm36_vm4 = vcmp.ge.s32.totalorder %v288_v0, %v35_v10 }
 0x12e   :  { %v37_v11 = vsel %vm36_vm4, 1.0, %v273_v1 }
 0x12f   :  { %38 = vadd.xlane.f32.xlu1 %v37_v11 }
 0x1b8   :  { %v39_v12 = vpop.xlane.xlu1 %38 }
 0x1b9   :  { %vm40_vm5 = vcmp.ge.f32.partialorder %v39_v12, 5.0 }
 0x1ba   :  { %v41_v13 = vsel %vm40_vm5, %v35_v10, %v34_v9 }
 0x1bb   :  { %v42_v14 = vor.u32 67108864, %v41_v13 }
 0x1bd   :  { %vm43_vm6 = vcmp.ge.s32.totalorder %v288_v0, %v42_v14 }
 0x1be   :  { %v44_v15 = vsel %vm43_vm6, 1.0, %v273_v1 }
 0x1bf   :  { %45 = vadd.xlane.f32.xlu1 %v44_v15 }
 0x248   :  { %v46_v16 = vpop.xlane.xlu1 %45 }
 0x249   :  { %vm47_vm7 = vcmp.ge.f32.partialorder %v46_v16, 5.0 }
 0x24a   :  { %v48_v17 = vsel %vm47_vm7, %v42_v14, %v41_v13 }
 0x24b   :  { %v49_v18 = vor.u32 33554432, %v48_v17 }
 0x24d   :  { %vm50_vm8 = vcmp.ge.s32.totalorder %v288_v0, %v49_v18 }
 0x24e   :  { %v51_v19 = vsel %vm50_vm8, 1.0, %v273_v1 }
 0x24f   :  { %52 = vadd.xlane.f32.xlu0 %v51_v19 }
 0x2d8   :  { %v53_v20 = vpop.xlane.xlu0 %52 }
 0x2d9   :  { %vm54_vm9 = vcmp.ge.f32.partialorder %v53_v20, 5.0 }
 0x2da   :  { %v55_v21 = vsel %vm54_vm9, %v49_v18, %v48_v17 }
 0x2db   :  { %v56_v22 = vor.u32 16777216, %v55_v21 }
 0x2dd   :  { %vm57_vm10 = vcmp.ge.s32.totalorder %v288_v0, %v56_v22 }
 0x2de   :  { %v58_v23 = vsel %vm57_vm10, 1.0, %v273_v1 }
 0x2df   :  { %59 = vadd.xlane.f32.xlu1 %v58_v23 }
 0x368   :  { %v60_v24 = vpop.xlane.xlu1 %59 }
 0x369   :  { %vm61_vm11 = vcmp.ge.f32.partialorder %v60_v24, 5.0 }
 0x36a   :  { %v62_v25 = vsel %vm61_vm11, %v56_v22, %v55_v21 }
 0x36b   :  { %v63_v26 = vor.u32 8388608, %v62_v25 }
 0x36d   :  { %vm64_vm12 = vcmp.ge.s32.totalorder %v288_v0, %v63_v26 }
 0x36e   :  { %v65_v27 = vsel %vm64_vm12, 1.0, %v273_v1 }
 0x36f   :  { %66 = vadd.xlane.f32.xlu0 %v65_v27 }
 0x3f8   :  { %v67_v28 = vpop.xlane.xlu0 %66 }
 0x3f9   :  { %vm68_vm13 = vcmp.ge.f32.partialorder %v67_v28, 5.0 }
 0x3fa   :  { %v69_v29 = vsel %vm68_vm13, %v63_v26, %v62_v25 }
 0x3fb   :  { %v70_v30 = vor.u32 4194304, %v69_v29 }
 0x3fd   :  { %vm71_vm14 = vcmp.ge.s32.totalorder %v288_v0, %v70_v30 }
 0x3fe   :  { %v72_v31 = vsel %vm71_vm14, 1.0, %v273_v1 }
 0x3ff   :  { %73 = vadd.xlane.f32.xlu1 %v72_v31 }
 0x488   :  { %v74_v32 = vpop.xlane.xlu1 %73 }
 0x489   :  { %vm75_vm15 = vcmp.ge.f32.partialorder %v74_v32, 5.0 }
 0x48a   :  { %v76_v33 = vsel %vm75_vm15, %v70_v30, %v69_v29 }
 0x48b   :  { %v77_v34 = vor.u32 2097152, %v76_v33 }
 0x48d   :  { %vm78_vm0 = vcmp.ge.s32.totalorder %v288_v0, %v77_v34 }
 0x48e   :  { %v79_v35 = vsel %vm78_vm0, 1.0, %v273_v1 }
 0x48f   :  { %80 = vadd.xlane.f32.xlu0 %v79_v35 }
 0x518   :  { %v81_v36 = vpop.xlane.xlu0 %80 }
 0x519   :  { %vm82_vm1 = vcmp.ge.f32.partialorder %v81_v36, 5.0 }
 0x51a   :  { %v83_v37 = vsel %vm82_vm1, %v77_v34, %v76_v33 }
 0x51b   :  { %v84_v38 = vor.u32 1048576, %v83_v37 }
 0x51d   :  { %vm85_vm2 = vcmp.ge.s32.totalorder %v288_v0, %v84_v38 }
 0x51e   :  { %v86_v39 = vsel %vm85_vm2, 1.0, %v273_v1 }
 0x51f   :  { %87 = vadd.xlane.f32.xlu1 %v86_v39 }
 0x5a8   :  { %v88_v40 = vpop.xlane.xlu1 %87 }
 0x5a9   :  { %vm89_vm3 = vcmp.ge.f32.partialorder %v88_v40, 5.0 }
 0x5aa   :  { %v90_v41 = vsel %vm89_vm3, %v84_v38, %v83_v37 }
 0x5ab   :  { %v91_v42 = vor.u32 524288, %v90_v41 }
 0x5ad   :  { %vm92_vm4 = vcmp.ge.s32.totalorder %v288_v0, %v91_v42 }
 0x5ae   :  { %v93_v43 = vsel %vm92_vm4, 1.0, %v273_v1 }
 0x5af   :  { %94 = vadd.xlane.f32.xlu0 %v93_v43 }
 0x638   :  { %v95_v44 = vpop.xlane.xlu0 %94 }
 0x639   :  { %vm96_vm5 = vcmp.ge.f32.partialorder %v95_v44, 5.0 }
 0x63a   :  { %v97_v45 = vsel %vm96_vm5, %v91_v42, %v90_v41 }
 0x63b   :  { %v98_v46 = vor.u32 262144, %v97_v45 }
 0x63d   :  { %vm99_vm6 = vcmp.ge.s32.totalorder %v288_v0, %v98_v46 }
 0x63e   :  { %v100_v47 = vsel %vm99_vm6, 1.0, %v273_v1 }
 0x63f   :  { %101 = vadd.xlane.f32.xlu1 %v100_v47 }
 0x6c8   :  { %v102_v48 = vpop.xlane.xlu1 %101 }
 0x6c9   :  { %vm103_vm7 = vcmp.ge.f32.partialorder %v102_v48, 5.0 }
 0x6ca   :  { %v104_v49 = vsel %vm103_vm7, %v98_v46, %v97_v45 }
 0x6cb   :  { %v105_v50 = vor.u32 131072, %v104_v49 }
 0x6cd   :  { %vm106_vm8 = vcmp.ge.s32.totalorder %v288_v0, %v105_v50 }
 0x6ce   :  { %v107_v51 = vsel %vm106_vm8, 1.0, %v273_v1 }
 0x6cf   :  { %108 = vadd.xlane.f32.xlu0 %v107_v51 }
 0x758   :  { %v109_v52 = vpop.xlane.xlu0 %108 }
 0x759   :  { %vm110_vm9 = vcmp.ge.f32.partialorder %v109_v52, 5.0 }
 0x75a   :  { %v111_v53 = vsel %vm110_vm9, %v105_v50, %v104_v49 }
 0x75b   :  { %v112_v54 = vor.u32 65536, %v111_v53 }
 0x75d   :  { %vm113_vm10 = vcmp.ge.s32.totalorder %v288_v0, %v112_v54 }
 0x75e   :  { %v114_v55 = vsel %vm113_vm10, 1.0, %v273_v1 }
 0x75f   :  { %115 = vadd.xlane.f32.xlu1 %v114_v55 }
 0x7e8   :  { %v116_v56 = vpop.xlane.xlu1 %115 }
 0x7e9   :  { %vm117_vm11 = vcmp.ge.f32.partialorder %v116_v56, 5.0 }
 0x7ea   :  { %v118_v57 = vsel %vm117_vm11, %v112_v54, %v111_v53 }
 0x7eb   :  { %v119_v58 = vor.u32 32768, %v118_v57 }
 0x7ed   :  { %vm120_vm12 = vcmp.ge.s32.totalorder %v288_v0, %v119_v58 }
 0x7ee   :  { %v121_v59 = vsel %vm120_vm12, 1.0, %v273_v1 }
 0x7ef   :  { %122 = vadd.xlane.f32.xlu0 %v121_v59 }
 0x878   :  { %v123_v60 = vpop.xlane.xlu0 %122 }
 0x879   :  { %vm124_vm13 = vcmp.ge.f32.partialorder %v123_v60, 5.0 }
 0x87a   :  { %v125_v61 = vsel %vm124_vm13, %v119_v58, %v118_v57 }
 0x87b   :  { %v126_v62 = vor.u32 16384, %v125_v61 }
 0x87d   :  { %vm127_vm14 = vcmp.ge.s32.totalorder %v288_v0, %v126_v62 }
 0x87e   :  { %v128_v63 = vsel %vm127_vm14, 1.0, %v273_v1 }
 0x87f   :  { %129 = vadd.xlane.f32.xlu1 %v128_v63 }
 0x908   :  { %v130_v2 = vpop.xlane.xlu1 %129 }
 0x909   :  { %vm131_vm15 = vcmp.ge.f32.partialorder %v130_v2, 5.0 }
 0x90a   :  { %v132_v3 = vsel %vm131_vm15, %v126_v62, %v125_v61 }
 0x90b   :  { %v133_v4 = vor.u32 8192, %v132_v3 }
 0x90d   :  { %vm134_vm0 = vcmp.ge.s32.totalorder %v288_v0, %v133_v4 }
 0x90e   :  { %v135_v5 = vsel %vm134_vm0, 1.0, %v273_v1 }
 0x90f   :  { %136 = vadd.xlane.f32.xlu0 %v135_v5 }
 0x998   :  { %v137_v6 = vpop.xlane.xlu0 %136 }
 0x999   :  { %vm138_vm1 = vcmp.ge.f32.partialorder %v137_v6, 5.0 }
 0x99a   :  { %v139_v7 = vsel %vm138_vm1, %v133_v4, %v132_v3 }
 0x99b   :  { %v140_v8 = vor.u32 4096, %v139_v7 }
 0x99d   :  { %vm141_vm2 = vcmp.ge.s32.totalorder %v288_v0, %v140_v8 }
 0x99e   :  { %v142_v9 = vsel %vm141_vm2, 1.0, %v273_v1 }
 0x99f   :  { %143 = vadd.xlane.f32.xlu1 %v142_v9 }
 0xa28   :  { %v144_v10 = vpop.xlane.xlu1 %143 }
 0xa29   :  { %vm145_vm3 = vcmp.ge.f32.partialorder %v144_v10, 5.0 }
 0xa2a   :  { %v146_v11 = vsel %vm145_vm3, %v140_v8, %v139_v7 }
 0xa2b   :  { %v147_v12 = vor.u32 2048, %v146_v11 }
 0xa2d   :  { %vm148_vm4 = vcmp.ge.s32.totalorder %v288_v0, %v147_v12 }
 0xa2e   :  { %v149_v13 = vsel %vm148_vm4, 1.0, %v273_v1 }
 0xa2f   :  { %150 = vadd.xlane.f32.xlu0 %v149_v13 }
 0xab8   :  { %v151_v14 = vpop.xlane.xlu0 %150 }
 0xab9   :  { %vm152_vm5 = vcmp.ge.f32.partialorder %v151_v14, 5.0 }
 0xaba   :  { %v153_v15 = vsel %vm152_vm5, %v147_v12, %v146_v11 }
 0xabb   :  { %v154_v16 = vor.u32 1024, %v153_v15 }
 0xabd   :  { %vm155_vm6 = vcmp.ge.s32.totalorder %v288_v0, %v154_v16 }
 0xabe   :  { %v156_v17 = vsel %vm155_vm6, 1.0, %v273_v1 }
 0xabf   :  { %157 = vadd.xlane.f32.xlu1 %v156_v17 }
 0xb48   :  { %v158_v18 = vpop.xlane.xlu1 %157 }
 0xb49   :  { %vm159_vm7 = vcmp.ge.f32.partialorder %v158_v18, 5.0 }
 0xb4a   :  { %v160_v19 = vsel %vm159_vm7, %v154_v16, %v153_v15 }
 0xb4b   :  { %v161_v20 = vor.u32 512, %v160_v19 }
 0xb4d   :  { %vm162_vm8 = vcmp.ge.s32.totalorder %v288_v0, %v161_v20 }
 0xb4e   :  { %v163_v21 = vsel %vm162_vm8, 1.0, %v273_v1 }
 0xb4f   :  { %164 = vadd.xlane.f32.xlu0 %v163_v21 }
 0xbd8   :  { %v165_v22 = vpop.xlane.xlu0 %164 }
 0xbd9   :  { %vm166_vm9 = vcmp.ge.f32.partialorder %v165_v22, 5.0 }
 0xbda   :  { %v167_v23 = vsel %vm166_vm9, %v161_v20, %v160_v19 }
 0xbdb   :  { %v168_v24 = vor.u32 256, %v167_v23 }
 0xbdd   :  { %vm169_vm10 = vcmp.ge.s32.totalorder %v288_v0, %v168_v24 }
 0xbde   :  { %v170_v25 = vsel %vm169_vm10, 1.0, %v273_v1 }
 0xbdf   :  { %171 = vadd.xlane.f32.xlu1 %v170_v25 }
 0xc68   :  { %v172_v26 = vpop.xlane.xlu1 %171 }
 0xc69   :  { %vm173_vm11 = vcmp.ge.f32.partialorder %v172_v26, 5.0 }
 0xc6a   :  { %v174_v27 = vsel %vm173_vm11, %v168_v24, %v167_v23 }
 0xc6b   :  { %v175_v28 = vor.u32 128, %v174_v27 }
 0xc6d   :  { %vm176_vm12 = vcmp.ge.s32.totalorder %v288_v0, %v175_v28 }
 0xc6e   :  { %v177_v29 = vsel %vm176_vm12, 1.0, %v273_v1 }
 0xc6f   :  { %178 = vadd.xlane.f32.xlu0 %v177_v29 }
 0xcf8   :  { %v179_v30 = vpop.xlane.xlu0 %178 }
 0xcf9   :  { %vm180_vm13 = vcmp.ge.f32.partialorder %v179_v30, 5.0 }
 0xcfa   :  { %v181_v31 = vsel %vm180_vm13, %v175_v28, %v174_v27  ;;  %vm240_vm13 = vcmask 7168  }
 0xcfb   :  { %v182_v32 = vor.u32 64, %v181_v31 }
 0xcfd   :  { %vm183_vm14 = vcmp.ge.s32.totalorder %v288_v0, %v182_v32 }
 0xcfe   :  { %v184_v33 = vsel %vm183_vm14, 1.0, %v273_v1 }
 0xcff   :  { %185 = vadd.xlane.f32.xlu1 %v184_v33 }
 0xd88   :  { %v186_v34 = vpop.xlane.xlu1 %185 }
 0xd89   :  { %vm187_vm15 = vcmp.ge.f32.partialorder %v186_v34, 5.0 }
 0xd8a   :  { %v188_v35 = vsel %vm187_vm15, %v182_v32, %v181_v31 }
 0xd8b   :  { %v189_v36 = vor.u32 32, %v188_v35 }
 0xd8d   :  { %vm190_vm0 = vcmp.ge.s32.totalorder %v288_v0, %v189_v36 }
 0xd8e   :  { %v191_v37 = vsel %vm190_vm0, 1.0, %v273_v1 }
 0xd8f   :  { %192 = vadd.xlane.f32.xlu0 %v191_v37 }
 0xe18   :  { %v193_v38 = vpop.xlane.xlu0 %192 }
 0xe19   :  { %vm194_vm1 = vcmp.ge.f32.partialorder %v193_v38, 5.0 }
 0xe1a   :  { %v195_v39 = vsel %vm194_vm1, %v189_v36, %v188_v35 }
 0xe1b   :  { %v196_v40 = vor.u32 16, %v195_v39 }
 0xe1d   :  { %vm197_vm2 = vcmp.ge.s32.totalorder %v288_v0, %v196_v40 }
 0xe1e   :  { %v198_v41 = vsel %vm197_vm2, 1.0, %v273_v1 }
 0xe1f   :  { %199 = vadd.xlane.f32.xlu1 %v198_v41 }
 0xea8   :  { %v200_v42 = vpop.xlane.xlu1 %199 }
 0xea9   :  { %vm201_vm3 = vcmp.ge.f32.partialorder %v200_v42, 5.0 }
 0xeaa   :  { %v202_v43 = vsel %vm201_vm3, %v196_v40, %v195_v39 }
 0xeab   :  { %v203_v44 = vor.u32 8, %v202_v43 }
 0xead   :  { %vm204_vm4 = vcmp.ge.s32.totalorder %v288_v0, %v203_v44 }
 0xeae   :  { %v205_v45 = vsel %vm204_vm4, 1.0, %v273_v1 }
 0xeaf   :  { %206 = vadd.xlane.f32.xlu0 %v205_v45 }
 0xf38   :  { %v207_v46 = vpop.xlane.xlu0 %206 }
 0xf39   :  { %vm208_vm5 = vcmp.ge.f32.partialorder %v207_v46, 5.0 }
 0xf3a   :  { %v209_v47 = vsel %vm208_vm5, %v203_v44, %v202_v43 }
 0xf3b   :  { %v210_v48 = vor.u32 4, %v209_v47 }
 0xf3d   :  { %vm211_vm6 = vcmp.ge.s32.totalorder %v288_v0, %v210_v48 }
 0xf3e   :  { %v212_v49 = vsel %vm211_vm6, 1.0, %v273_v1 }
 0xf3f   :  { %213 = vadd.xlane.f32.xlu1 %v212_v49 }
 0xfc8   :  { %v214_v50 = vpop.xlane.xlu1 %213 }
 0xfc9   :  { %vm215_vm7 = vcmp.ge.f32.partialorder %v214_v50, 5.0 }
 0xfca   :  { %v216_v51 = vsel %vm215_vm7, %v210_v48, %v209_v47 }
 0xfcb   :  { %v217_v52 = vor.u32 2, %v216_v51 }
 0xfcd   :  { %vm218_vm8 = vcmp.ge.s32.totalorder %v288_v0, %v217_v52 }
 0xfce   :  { %v219_v53 = vsel %vm218_vm8, 1.0, %v273_v1 }
 0xfcf   :  { %220 = vadd.xlane.f32.xlu0 %v219_v53 }
0x1058   :  { %v221_v54 = vpop.xlane.xlu0 %220 }
0x1059   :  { %vm222_vm9 = vcmp.ge.f32.partialorder %v221_v54, 5.0 }
0x105a   :  { %v223_v55 = vsel %vm222_vm9, %v217_v52, %v216_v51 }
0x105b   :  { %v224_v56 = vor.u32 1, %v223_v55 }
0x105d   :  { %vm225_vm10 = vcmp.ge.s32.totalorder %v288_v0, %v224_v56 }
0x105e   :  { %v226_v57 = vsel %vm225_vm10, 1.0, %v273_v1 }
0x105f   :  { %227 = vadd.xlane.f32.xlu1 %v226_v57 }
0x10e8   :  { %v228_v58 = vpop.xlane.xlu1 %227 }
0x10e9   :  { %vm229_vm11 = vcmp.ge.f32.partialorder %v228_v58, 5.0 }
0x10ea   :  { %v230_v59 = vsel %vm229_vm11, %v224_v56, %v223_v55 }
0x10eb   :  { %vm232_vm12 = vcmp.gt.f32.partialorder %v288_v0, %v230_v59  ;;  %v233_v60 = vsub.f32 %v288_v0, %v230_v59 }
0x10ed   :  { %v234_v61 = vsel %vm232_vm12, %v233_v60, 0.0 }
0x10ee   :  { %235 = vadd.xlane.f32.xlu0 %v234_v61 }
0x1177   :  { %v236_v62 = vpop.xlane.xlu0 %235 }
0x1178   :  { %v238_v63 = vmul.f32 0.2, %v236_v62 }
0x117a   :  { %v239_v2 = vadd.f32 %v238_v63, %v230_v59 }
0x117c   :  { %241 = vst.msk [vmem:[%s356_s1] sm:$0xff] %vm240_vm13, %v239_v2 }
0x117d   :  { %246 = vsyncpa [#allocation3], 1 }

</bundles_post_ra>
